<compile_context>
chip_gen: v7x
topology: tpu7x:2x2x1
jax: 0.10.0
libtpu: 0.0.40
codegen_flags: <defaults>
</compile_context>

<pallas_src>
import math

import jax
import jax.numpy as jnp
from jax.experimental import pallas as pl
from jax.experimental.pallas import tpu as pltpu

EPS = 1e-5          # nn.LayerNorm default eps
NUM_HEADS = 2       # nhead=2 in the PyTorch module
NEG_INF = -1e9      # additive key-padding mask value.  NOTE: PyTorch uses
                    # -inf; the only behavioral difference is the degenerate
                    # all-keys-padded row (PyTorch -> NaN, here -> uniform).
HEAD_LANES = 128    # lane-padded width of the fused classification-head out


def _layernorm(x, gamma, beta):
    # One-pass form: both cross-lane reductions read the same operand.
    mu = jnp.mean(x, axis=-1, keepdims=True)
    m2 = jnp.mean(x * x, axis=-1, keepdims=True)
    var = m2 - mu * mu
    return (x - mu) * jax.lax.rsqrt(var + EPS) * gamma + beta


def classifier_kernel(ids_ref, mask_ref, embt_ref, ipw_ref, opw_ref, l1w_ref,
                      fhw_ref, vp_ref, out_ref):
    TB, S, _ = ids_ref.shape
    V, E = embt_ref.shape
    hd = E // NUM_HEADS
    M = TB * S
    dff = l1w_ref.shape[1]          # = 2 in this module
    CL = out_ref.shape[2]           # lane-padded head width (128)

    # ---- unpack the packed "vector params" array (one small tensor per row)
    ipb = vp_ref[0:1, 0:3 * E]      # in_proj bias (Q third pre-scaled) [1,3E]
    opb = vp_ref[1:2, 0:E]          # out_proj bias       [1, E]
    ln1g = vp_ref[2:3, 0:E]
    ln1b = vp_ref[3:4, 0:E]
    l1b = vp_ref[4:5, 0:dff]        # linear1 bias        [1, dff]
    w2r0 = vp_ref[5:6, 0:E]         # linear2 weight row0 [1, E]
    w2r1 = vp_ref[6:7, 0:E]         # linear2 weight row1 [1, E]
    l2b = vp_ref[7:8, 0:E]
    ln2g = vp_ref[8:9, 0:E]
    ln2b = vp_ref[9:10, 0:E]
    fhb = vp_ref[10:11, 0:CL]       # fused head bias     [1, 128] (0-padded)

    # ---- in-kernel embedding gather: one-hot(ids) @ embed_table on the MXU.
    ids3 = ids_ref[...]                                       # [TB, S, 1] i32
    vl = jax.lax.broadcasted_iota(jnp.int32, (TB, S, V), 2)   # [TB, S, V]
    one_hot = (ids3 == vl).astype(jnp.float32).reshape(M, V)  # [M, V]
    x2 = jnp.dot(one_hot, embt_ref[...],
                 preferred_element_type=jnp.float32)          # [M, E]

    # ---- bool key-padding mask -> additive mask (built in-kernel)
    mask_add = jnp.where(mask_ref[...] != 0, NEG_INF, 0.0)    # [TB, 1, S]

    # ---- self-attention: one fused QKV projection over all TB*S rows.
    # (Q columns of ipw / ipb were pre-scaled by 1/sqrt(hd) in the wrapper.)
    qkv = jnp.dot(x2, ipw_ref[...], preferred_element_type=jnp.float32) + ipb
    qkv3 = qkv.reshape(TB, S, 3 * E)

    attn2 = jnp.zeros((M, E), jnp.float32)
    for h in range(NUM_HEADS):                         # static unroll, 2 heads
        lo = h * hd
        qh = qkv3[:, :, lo:lo + hd]                    # [TB, S, hd]
        kh = qkv3[:, :, E + lo:E + lo + hd]
        vh = qkv3[:, :, 2 * E + lo:2 * E + lo + hd]
        s = jnp.einsum('bqd,bkd->bqk', qh, kh,
                       preferred_element_type=jnp.float32) + mask_add
        s = s - jnp.max(s, axis=-1, keepdims=True)
        p = jnp.exp(s)
        p = p * pl.reciprocal(jnp.sum(p, axis=-1, keepdims=True), approx=True)
        oh = jnp.einsum('bqk,bkd->bqd', p, vh,
                        preferred_element_type=jnp.float32)
        # Fold the per-head slice of the out-projection instead of
        # concatenating head outputs along lanes.
        attn2 = attn2 + jnp.dot(oh.reshape(M, hd), opw_ref[lo:lo + hd, :],
                                preferred_element_type=jnp.float32)
    attn2 = attn2 + opb

    # ---- residual + LayerNorm (post-norm; PyTorch default norm_first=False)
    src = _layernorm(x2 + attn2, ln1g, ln1b)

    # ---- feed-forward (relu, dim_feedforward=2); dropout = identity (eval).
    # Second matmul (K=2) done on the VPU as two broadcast multiplies.
    h1 = jnp.maximum(
        jnp.dot(src, l1w_ref[...], preferred_element_type=jnp.float32) + l1b,
        0.0)                                           # [M, 2]
    ff = h1[:, 0:1] * w2r0 + h1[:, 1:2] * w2r1 + l2b   # [M, E]
    src = _layernorm(src + ff, ln2g, ln2b)

    # ---- AdaptiveAvgPool1d(1) / AdaptiveMaxPool1d(1) over the sequence axis
    # (pools all S positions, incl. padded ones — same as the PyTorch module),
    # then relu (+ identity dropout, eval mode).
    src3 = src.reshape(TB, S, E)
    x_avg = jnp.maximum(jnp.mean(src3, axis=1), 0.0)   # [TB, E]
    x_max = jnp.maximum(jnp.max(src3, axis=1), 0.0)    # [TB, E]

    # ---- fused classification heads: ONE [2E, 128] lane-dense MXU pass.
    # Rows [0:E] (max-pool branch) feed the category lanes [0:C]; rows [E:2E]
    # (avg-pool branch) feed the possibility lanes [C:C+P]; rest zero-padded.
    lhs = jnp.concatenate([x_max, x_avg], axis=-1)     # [TB, 2E]
    heads = jnp.dot(lhs, fhw_ref[...],
                    preferred_element_type=jnp.float32) + fhb
    out_ref[...] = heads.reshape(TB, 1, CL)


def classifier_forward(token_ids, attention_mask, params, *, block_b=512):
    B, S = token_ids.shape
    vocab, E = params["embed"].shape
    C = params["fc_cat_w"].shape[0]
    P = params["fc_pos_w"].shape[0]
    dff = params["lin1_w"].shape[0]
    hd = E // NUM_HEADS
    assert dff == 2, "module spec fixes dim_feedforward=2"
    assert C + P <= HEAD_LANES

    # Batch tiling: TB sequences per grid step (TB*S rows per matmul).
    # When B > 1, keep at least two grid steps so dimension_semantics
    # ("parallel",) can shard steps across v7x's two TensorCores.
    TB = min(block_b, B)
    if B > 1:
        TB = min(TB, pl.cdiv(B, 2))
    B_pad = pl.cdiv(B, TB) * TB
    grid_b = B_pad // TB

    # Token ids shaped [B_pad, S, 1] so each id sits on its own sublane row
    # (the orientation the in-kernel one-hot needs -> no in-kernel relayout).
    ids = jnp.pad(token_ids.astype(jnp.int32),
                  ((0, B_pad - B), (0, 0)))[..., None]         # [B_pad, S, 1]
    msk = jnp.pad(attention_mask.astype(jnp.int32),
                  ((0, B_pad - B), (0, 0))).reshape(B_pad, 1, S)

    # --- embedding table, vocab padded to a lane-dense multiple of 128;
    # the gather happens in-kernel as one-hot @ table (MXU).
    Vpad = ((vocab + 127) // 128) * 128
    # TODO(synk): for very large vocabularies (table >> VMEM) add a
    # scalar-prefetched DMA-gather path instead of the one-hot matmul.
    assert Vpad <= 2048, "one-hot in-kernel gather assumes a small vocab"
    embt = jnp.zeros((Vpad, E), jnp.float32).at[:vocab].set(
        params["embed"].astype(jnp.float32))

    # --- 2-D weights, pre-transposed to [in, out]; Q third of in_proj
    # pre-scaled by 1/sqrt(head_dim) once, at trace time.
    scale = 1.0 / math.sqrt(hd)
    ipw = params["in_proj_w"].T.astype(jnp.float32)            # [E, 3E]
    ipw = ipw.at[:, :E].multiply(scale)
    ipb = params["in_proj_b"].astype(jnp.float32).at[:E].multiply(scale)
    opw = params["out_proj_w"].T.astype(jnp.float32)           # [E, E]
    l1w = params["lin1_w"].T.astype(jnp.float32)               # [E, dff]

    # --- the two tiny heads fused into ONE lane-dense [2E, 128] weight.
    fhw = jnp.zeros((2 * E, HEAD_LANES), jnp.float32)
    fhw = fhw.at[:E, :C].set(params["fc_cat_w"].T.astype(jnp.float32))
    fhw = fhw.at[E:, C:C + P].set(params["fc_pos_w"].T.astype(jnp.float32))

    # --- all 1-D params packed into one [16, L] array (one row per tensor).
    L = max(3 * E, HEAD_LANES)

    def row(v):
        v = jnp.asarray(v, jnp.float32).reshape(-1)
        return jnp.pad(v, (0, L - v.shape[0]))

    fhb = jnp.zeros((HEAD_LANES,), jnp.float32)
    fhb = fhb.at[:C].set(params["fc_cat_b"].astype(jnp.float32))
    fhb = fhb.at[C:C + P].set(params["fc_pos_b"].astype(jnp.float32))
    w2 = params["lin2_w"].T.astype(jnp.float32)                # [dff, E]
    vp_rows = [
        row(ipb), row(params["out_proj_b"]),
        row(params["ln1_g"]), row(params["ln1_b"]),
        row(params["lin1_b"]), row(w2[0]), row(w2[1]),
        row(params["lin2_b"]), row(params["ln2_g"]), row(params["ln2_b"]),
        row(fhb),
    ]
    vp_rows += [jnp.zeros((L,), jnp.float32)] * (16 - len(vp_rows))
    vp = jnp.stack(vp_rows)                                    # [16, L]

    out = pl.pallas_call(
        classifier_kernel,
        grid=(grid_b,),
        in_specs=[
            pl.BlockSpec((TB, S, 1), lambda b: (b, 0, 0)),      # token ids
            pl.BlockSpec((TB, 1, S), lambda b: (b, 0, 0)),      # padding mask
            pl.BlockSpec(embt.shape, lambda b: (0, 0)),         # embed table
            pl.BlockSpec(ipw.shape, lambda b: (0, 0)),
            pl.BlockSpec(opw.shape, lambda b: (0, 0)),
            pl.BlockSpec(l1w.shape, lambda b: (0, 0)),
            pl.BlockSpec(fhw.shape, lambda b: (0, 0)),
            pl.BlockSpec(vp.shape, lambda b: (0, 0)),
        ],
        out_specs=pl.BlockSpec((TB, 1, HEAD_LANES), lambda b: (b, 0, 0)),
        out_shape=jax.ShapeDtypeStruct((B_pad, 1, HEAD_LANES), jnp.float32),
        compiler_params=pltpu.CompilerParams(
            dimension_semantics=("parallel",),
            vmem_limit_bytes=32 * 1024 * 1024),
    )(ids, msk, embt, ipw, opw, l1w, fhw, vp)

    out2 = out.reshape(B_pad, HEAD_LANES)
    category = out2[:B, :C]
    possibility = out2[:B, C:C + P]
    return category, possibility


# ----------------------------------------------------------------------------
# Pure-JAX reference (eval-mode PyTorch semantics) for correctness checking.
# ----------------------------------------------------------------------------
def classifier_reference(token_ids, attention_mask, params):
    emb = params["embed"][token_ids].astype(jnp.float32)
    B, S, E = emb.shape
    hd = E // NUM_HEADS
    mask_add = jnp.where(attention_mask, NEG_INF, 0.0)[:, None, :]

    qkv = emb @ params["in_proj_w"].T + params["in_proj_b"]
    q, k, v = qkv[..., :E], qkv[..., E:2 * E], qkv[..., 2 * E:]
    outs = []
    for h in range(NUM_HEADS):
        qh = q[..., h * hd:(h + 1) * hd] / math.sqrt(hd)
        kh = k[..., h * hd:(h + 1) * hd]
        vh = v[..., h * hd:(h + 1) * hd]
        s = jnp.einsum('bqd,bkd->bqk', qh, kh) + mask_add
        p = jax.nn.softmax(s, axis=-1)
        outs.append(jnp.einsum('bqk,bkd->bqd', p, vh))
    attn = jnp.concatenate(outs, -1) @ params["out_proj_w"].T + params["out_proj_b"]

    def ln(x, g, b):
        mu = x.mean(-1, keepdims=True)
        var = ((x - mu) ** 2).mean(-1, keepdims=True)
        return (x - mu) / jnp.sqrt(var + EPS) * g + b

    src = ln(emb + attn, params["ln1_g"], params["ln1_b"])
    h1 = jax.nn.relu(src @ params["lin1_w"].T + params["lin1_b"])
    ff = h1 @ params["lin2_w"].T + params["lin2_b"]
    src = ln(src + ff, params["ln2_g"], params["ln2_b"])

    x_avg = jax.nn.relu(src.mean(axis=1))
    x_max = jax.nn.relu(src.max(axis=1))
    cat = x_max @ params["fc_cat_w"].T + params["fc_cat_b"]
    pos = x_avg @ params["fc_pos_w"].T + params["fc_pos_b"]
    return cat, pos


def init_params(key, vocab, E, C, P, dff=2):
    ks = jax.random.split(key, 12)

    def n(k, shape, scale=0.05):
        return jax.random.normal(k, shape, jnp.float32) * scale

    return dict(
        embed=n(ks[0], (vocab, E), 1.0),
        in_proj_w=n(ks[1], (3 * E, E)),
        in_proj_b=n(ks[2], (3 * E,)),
        out_proj_w=n(ks[3], (E, E)),
        out_proj_b=n(ks[4], (E,)),
        ln1_g=jnp.ones((E,), jnp.float32),
        ln1_b=jnp.zeros((E,), jnp.float32),
        lin1_w=n(ks[5], (dff, E)),
        lin1_b=n(ks[6], (dff,)),
        lin2_w=n(ks[7], (E, dff)),
        lin2_b=n(ks[8], (E,)),
        ln2_g=jnp.ones((E,), jnp.float32),
        ln2_b=jnp.zeros((E,), jnp.float32),
        fc_cat_w=n(ks[9], (C, E)),
        fc_cat_b=n(ks[10], (C,)),
        fc_pos_w=n(ks[11], (P, E)),
        fc_pos_b=jnp.zeros((P,), jnp.float32),
    )


if __name__ == "__main__":
    key = jax.random.PRNGKey(0)
    kp, kx = jax.random.split(key)

    VOCAB, E, C, P = 50, 32, 5, 3   # max_vocab_size, embed_dim, category/possibility counts
    B, S = 2, 8

    params = init_params(kp, VOCAB, E, C, P)
    token_ids = jax.random.randint(kx, (B, S), 0, VOCAB, dtype=jnp.int32)
    # True = padded position (ignored by attention), like src_key_padding_mask.
    attention_mask = jnp.array(
        [[False] * S, [False] * (S - 2) + [True] * 2], dtype=jnp.bool_)

    category, possibility = classifier_forward(token_ids, attention_mask, params)
    jax.block_until_ready((category, possibility))

    assert category.shape == (B, C) and possibility.shape == (B, P)
    assert bool(jnp.all(jnp.isfinite(category)))
    assert bool(jnp.all(jnp.isfinite(possibility)))

    cat_ref, pos_ref = classifier_reference(token_ids, attention_mask, params)
    assert bool(jnp.allclose(category, cat_ref, rtol=1e-2, atol=1e-2)), (
        float(jnp.max(jnp.abs(category - cat_ref))))
    assert bool(jnp.allclose(possibility, pos_ref, rtol=1e-2, atol=1e-2)), (
        float(jnp.max(jnp.abs(possibility - pos_ref))))

    print("KERNEL_OK")
</pallas_src>

<mosaic_0001>
module attributes {stable_mosaic.version = 11 : i64} {
  func.func @classifier_kernel(%arg0: i32, %arg1: memref<1x8x1xi32, #tpu.memory_space<vmem>>, %arg2: memref<1x1x8xi32, #tpu.memory_space<vmem>>, %arg3: memref<128x32xf32, #tpu.memory_space<vmem>>, %arg4: memref<32x96xf32, #tpu.memory_space<vmem>>, %arg5: memref<32x32xf32, #tpu.memory_space<vmem>>, %arg6: memref<32x2xf32, #tpu.memory_space<vmem>>, %arg7: memref<64x128xf32, #tpu.memory_space<vmem>>, %arg8: memref<16x128xf32, #tpu.memory_space<vmem>>, %arg9: memref<1x1x128xf32, #tpu.memory_space<vmem>>) attributes {dimension_semantics = [#tpu.dimension_semantics<parallel>], iteration_bounds = array<i64: 2>, scalar_prefetch = 0 : i64, scratch_operands = 0 : i64, tpu.core_type = #tpu.core_type<tc>, window_params = [{transform_indices = @transform_0, window_bounds = array<i64: 1, 8, 1>}, {transform_indices = @transform_1, window_bounds = array<i64: 1, 1, 8>}, {pipeline_mode = #tpu.pipeline_mode<synchronous>, transform_indices = @transform_2, window_bounds = array<i64: 128, 32>}, {pipeline_mode = #tpu.pipeline_mode<synchronous>, transform_indices = @transform_3, window_bounds = array<i64: 32, 96>}, {pipeline_mode = #tpu.pipeline_mode<synchronous>, transform_indices = @transform_4, window_bounds = array<i64: 32, 32>}, {pipeline_mode = #tpu.pipeline_mode<synchronous>, transform_indices = @transform_5, window_bounds = array<i64: 32, 2>}, {pipeline_mode = #tpu.pipeline_mode<synchronous>, transform_indices = @transform_6, window_bounds = array<i64: 64, 128>}, {pipeline_mode = #tpu.pipeline_mode<synchronous>, transform_indices = @transform_7, window_bounds = array<i64: 16, 128>}, {transform_indices = @transform_8, window_bounds = array<i64: 1, 1, 128>}]} {
    %c0 = arith.constant 0 : index
    %c0_0 = arith.constant 0 : index
    %0 = vector.load %arg8[%c0, %c0_0] : memref<16x128xf32, #tpu.memory_space<vmem>>, vector<1x96xf32>
    %c1 = arith.constant 1 : index
    %c0_1 = arith.constant 0 : index
    %1 = vector.load %arg8[%c1, %c0_1] : memref<16x128xf32, #tpu.memory_space<vmem>>, vector<1x32xf32>
    %c2 = arith.constant 2 : index
    %c0_2 = arith.constant 0 : index
    %2 = vector.load %arg8[%c2, %c0_2] : memref<16x128xf32, #tpu.memory_space<vmem>>, vector<1x32xf32>
    %c3 = arith.constant 3 : index
    %c0_3 = arith.constant 0 : index
    %3 = vector.load %arg8[%c3, %c0_3] : memref<16x128xf32, #tpu.memory_space<vmem>>, vector<1x32xf32>
    %c4 = arith.constant 4 : index
    %c0_4 = arith.constant 0 : index
    %4 = vector.load %arg8[%c4, %c0_4] : memref<16x128xf32, #tpu.memory_space<vmem>>, vector<1x2xf32>
    %c5 = arith.constant 5 : index
    %c0_5 = arith.constant 0 : index
    %5 = vector.load %arg8[%c5, %c0_5] : memref<16x128xf32, #tpu.memory_space<vmem>>, vector<1x32xf32>
    %c6 = arith.constant 6 : index
    %c0_6 = arith.constant 0 : index
    %6 = vector.load %arg8[%c6, %c0_6] : memref<16x128xf32, #tpu.memory_space<vmem>>, vector<1x32xf32>
    %c7 = arith.constant 7 : index
    %c0_7 = arith.constant 0 : index
    %7 = vector.load %arg8[%c7, %c0_7] : memref<16x128xf32, #tpu.memory_space<vmem>>, vector<1x32xf32>
    %c8 = arith.constant 8 : index
    %c0_8 = arith.constant 0 : index
    %8 = vector.load %arg8[%c8, %c0_8] : memref<16x128xf32, #tpu.memory_space<vmem>>, vector<1x32xf32>
    %c9 = arith.constant 9 : index
    %c0_9 = arith.constant 0 : index
    %9 = vector.load %arg8[%c9, %c0_9] : memref<16x128xf32, #tpu.memory_space<vmem>>, vector<1x32xf32>
    %c10 = arith.constant 10 : index
    %c0_10 = arith.constant 0 : index
    %10 = vector.load %arg8[%c10, %c0_10] : memref<16x128xf32, #tpu.memory_space<vmem>>, vector<1x128xf32>
    %c0_11 = arith.constant 0 : index
    %c0_12 = arith.constant 0 : index
    %c0_13 = arith.constant 0 : index
    %11 = vector.load %arg1[%c0_11, %c0_12, %c0_13] : memref<1x8x1xi32, #tpu.memory_space<vmem>>, vector<1x8x1xi32>
    %12 = tpu.iota {dimensions = array<i32: 2>} : vector<1x8x128xi32>
    %13 = vector.broadcast %11 : vector<1x8x1xi32> to vector<1x8x128xi32>
    %14 = arith.cmpi eq, %13, %12 : vector<1x8x128xi32>
    %15 = arith.extui %14 : vector<1x8x128xi1> to vector<1x8x128xi32>
    %16 = arith.sitofp %15 : vector<1x8x128xi32> to vector<1x8x128xf32>
    %17 = vector.shape_cast %16 : vector<1x8x128xf32> to vector<8x128xf32>
    %c0_14 = arith.constant 0 : index
    %c0_15 = arith.constant 0 : index
    %18 = vector.load %arg3[%c0_14, %c0_15] : memref<128x32xf32, #tpu.memory_space<vmem>>, vector<128x32xf32>
    %cst = arith.constant dense<0.000000e+00> : vector<8x32xf32>
    %19 = tpu.matmul %17, %18, %cst {dimension_numbers = #tpu.dot_dimension_numbers<[1], [0], [0], [1], [0, 0, 1, 1], [], []>} : vector<8x128xf32>, vector<128x32xf32>, vector<8x32xf32> -> vector<8x32xf32>
    %c0_16 = arith.constant 0 : index
    %c0_17 = arith.constant 0 : index
    %c0_18 = arith.constant 0 : index
    %20 = vector.load %arg2[%c0_16, %c0_17, %c0_18] : memref<1x1x8xi32, #tpu.memory_space<vmem>>, vector<1x1x8xi32>
    %c0_i32 = arith.constant 0 : i32
    %21 = vector.broadcast %c0_i32 : i32 to vector<1x1x8xi32>
    %22 = arith.cmpi ne, %20, %21 : vector<1x1x8xi32>
    %cst_19 = arith.constant -1.000000e+09 : f32
    %cst_20 = arith.constant 0.000000e+00 : f32
    %23 = vector.broadcast %cst_19 : f32 to vector<1x1x8xf32>
    %24 = vector.broadcast %cst_20 : f32 to vector<1x1x8xf32>
    %25 = arith.select %22, %23, %24 : vector<1x1x8xi1>, vector<1x1x8xf32>
    %c0_21 = arith.constant 0 : index
    %c0_22 = arith.constant 0 : index
    %26 = vector.load %arg4[%c0_21, %c0_22] : memref<32x96xf32, #tpu.memory_space<vmem>>, vector<32x96xf32>
    %cst_23 = arith.constant dense<0.000000e+00> : vector<8x96xf32>
    %27 = tpu.matmul %19, %26, %cst_23 {dimension_numbers = #tpu.dot_dimension_numbers<[1], [0], [0], [1], [0, 0, 1, 1], [], []>} : vector<8x32xf32>, vector<32x96xf32>, vector<8x96xf32> -> vector<8x96xf32>
    %28 = vector.broadcast %0 : vector<1x96xf32> to vector<8x96xf32>
    %29 = arith.addf %27, %28 : vector<8x96xf32>
    %30 = vector.shape_cast %29 : vector<8x96xf32> to vector<1x8x96xf32>
    %cst_24 = arith.constant 0.000000e+00 : f32
    %31 = vector.broadcast %cst_24 : f32 to vector<8x32xf32>
    %32 = vector.extract_strided_slice %30 {offsets = [0, 0, 0], sizes = [1, 8, 16], strides = [1, 1, 1]} : vector<1x8x96xf32> to vector<1x8x16xf32>
    %33 = vector.extract_strided_slice %30 {offsets = [0, 0, 32], sizes = [1, 8, 16], strides = [1, 1, 1]} : vector<1x8x96xf32> to vector<1x8x16xf32>
    %34 = vector.extract_strided_slice %30 {offsets = [0, 0, 64], sizes = [1, 8, 16], strides = [1, 1, 1]} : vector<1x8x96xf32> to vector<1x8x16xf32>
    "tpu.trace_start"() <{level = 10 : i32, message = "bqd,bkd->bqk"}> : () -> ()
    %cst_25 = arith.constant dense<0.000000e+00> : vector<1x8x8xf32>
    %35 = tpu.matmul %32, %33, %cst_25 {dimension_numbers = #tpu.dot_dimension_numbers<[2], [2], [1], [1], [0, 0, 0, 1, 1, 1], [0], [0]>} : vector<1x8x16xf32>, vector<1x8x16xf32>, vector<1x8x8xf32> -> vector<1x8x8xf32>
    "tpu.trace_stop"() : () -> ()
    %36 = vector.broadcast %25 : vector<1x1x8xf32> to vector<1x8x8xf32>
    %37 = arith.addf %35, %36 : vector<1x8x8xf32>
    %cst_26 = arith.constant dense<0xFF800000> : vector<1x8xf32>
    %38 = vector.multi_reduction <maximumf>, %37, %cst_26 [2] : vector<1x8x8xf32> to vector<1x8xf32>
    %39 = vector.shape_cast %38 : vector<1x8xf32> to vector<1x8x1xf32>
    %40 = vector.broadcast %39 : vector<1x8x1xf32> to vector<1x8x8xf32>
    %41 = arith.subf %37, %40 : vector<1x8x8xf32>
    %42 = math.exp %41 : vector<1x8x8xf32>
    %cst_27 = arith.constant dense<0.000000e+00> : vector<1x8xf32>
    %43 = vector.multi_reduction <add>, %42, %cst_27 [2] : vector<1x8x8xf32> to vector<1x8xf32>
    %44 = vector.shape_cast %43 : vector<1x8xf32> to vector<1x8x1xf32>
    %45 = tpu.reciprocal %44 {approx = true} : vector<1x8x1xf32> -> vector<1x8x1xf32>
    %46 = vector.broadcast %45 : vector<1x8x1xf32> to vector<1x8x8xf32>
    %47 = arith.mulf %42, %46 : vector<1x8x8xf32>
    "tpu.trace_start"() <{level = 10 : i32, message = "bqk,bkd->bqd"}> : () -> ()
    %cst_28 = arith.constant dense<0.000000e+00> : vector<1x8x16xf32>
    %48 = tpu.matmul %47, %34, %cst_28 {dimension_numbers = #tpu.dot_dimension_numbers<[2], [1], [1], [2], [0, 0, 0, 1, 1, 2], [0], [0]>} : vector<1x8x8xf32>, vector<1x8x16xf32>, vector<1x8x16xf32> -> vector<1x8x16xf32>
    "tpu.trace_stop"() : () -> ()
    %49 = vector.shape_cast %48 : vector<1x8x16xf32> to vector<8x16xf32>
    %c0_29 = arith.constant 0 : index
    %c0_30 = arith.constant 0 : index
    %50 = vector.load %arg5[%c0_29, %c0_30] : memref<32x32xf32, #tpu.memory_space<vmem>>, vector<16x32xf32>
    %cst_31 = arith.constant dense<0.000000e+00> : vector<8x32xf32>
    %51 = tpu.matmul %49, %50, %cst_31 {dimension_numbers = #tpu.dot_dimension_numbers<[1], [0], [0], [1], [0, 0, 1, 1], [], []>} : vector<8x16xf32>, vector<16x32xf32>, vector<8x32xf32> -> vector<8x32xf32>
    %52 = arith.addf %31, %51 : vector<8x32xf32>
    %53 = vector.extract_strided_slice %30 {offsets = [0, 0, 16], sizes = [1, 8, 16], strides = [1, 1, 1]} : vector<1x8x96xf32> to vector<1x8x16xf32>
    %54 = vector.extract_strided_slice %30 {offsets = [0, 0, 48], sizes = [1, 8, 16], strides = [1, 1, 1]} : vector<1x8x96xf32> to vector<1x8x16xf32>
    %55 = vector.extract_strided_slice %30 {offsets = [0, 0, 80], sizes = [1, 8, 16], strides = [1, 1, 1]} : vector<1x8x96xf32> to vector<1x8x16xf32>
    "tpu.trace_start"() <{level = 10 : i32, message = "bqd,bkd->bqk"}> : () -> ()
    %cst_32 = arith.constant dense<0.000000e+00> : vector<1x8x8xf32>
    %56 = tpu.matmul %53, %54, %cst_32 {dimension_numbers = #tpu.dot_dimension_numbers<[2], [2], [1], [1], [0, 0, 0, 1, 1, 1], [0], [0]>} : vector<1x8x16xf32>, vector<1x8x16xf32>, vector<1x8x8xf32> -> vector<1x8x8xf32>
    "tpu.trace_stop"() : () -> ()
    %57 = vector.broadcast %25 : vector<1x1x8xf32> to vector<1x8x8xf32>
    %58 = arith.addf %56, %57 : vector<1x8x8xf32>
    %cst_33 = arith.constant dense<0xFF800000> : vector<1x8xf32>
    %59 = vector.multi_reduction <maximumf>, %58, %cst_33 [2] : vector<1x8x8xf32> to vector<1x8xf32>
    %60 = vector.shape_cast %59 : vector<1x8xf32> to vector<1x8x1xf32>
    %61 = vector.broadcast %60 : vector<1x8x1xf32> to vector<1x8x8xf32>
    %62 = arith.subf %58, %61 : vector<1x8x8xf32>
    %63 = math.exp %62 : vector<1x8x8xf32>
    %cst_34 = arith.constant dense<0.000000e+00> : vector<1x8xf32>
    %64 = vector.multi_reduction <add>, %63, %cst_34 [2] : vector<1x8x8xf32> to vector<1x8xf32>
    %65 = vector.shape_cast %64 : vector<1x8xf32> to vector<1x8x1xf32>
    %66 = tpu.reciprocal %65 {approx = true} : vector<1x8x1xf32> -> vector<1x8x1xf32>
    %67 = vector.broadcast %66 : vector<1x8x1xf32> to vector<1x8x8xf32>
    %68 = arith.mulf %63, %67 : vector<1x8x8xf32>
    "tpu.trace_start"() <{level = 10 : i32, message = "bqk,bkd->bqd"}> : () -> ()
    %cst_35 = arith.constant dense<0.000000e+00> : vector<1x8x16xf32>
    %69 = tpu.matmul %68, %55, %cst_35 {dimension_numbers = #tpu.dot_dimension_numbers<[2], [1], [1], [2], [0, 0, 0, 1, 1, 2], [0], [0]>} : vector<1x8x8xf32>, vector<1x8x16xf32>, vector<1x8x16xf32> -> vector<1x8x16xf32>
    "tpu.trace_stop"() : () -> ()
    %70 = vector.shape_cast %69 : vector<1x8x16xf32> to vector<8x16xf32>
    %c16 = arith.constant 16 : index
    %c0_36 = arith.constant 0 : index
    %71 = vector.load %arg5[%c16, %c0_36] : memref<32x32xf32, #tpu.memory_space<vmem>>, vector<16x32xf32>
    %cst_37 = arith.constant dense<0.000000e+00> : vector<8x32xf32>
    %72 = tpu.matmul %70, %71, %cst_37 {dimension_numbers = #tpu.dot_dimension_numbers<[1], [0], [0], [1], [0, 0, 1, 1], [], []>} : vector<8x16xf32>, vector<16x32xf32>, vector<8x32xf32> -> vector<8x32xf32>
    %73 = arith.addf %52, %72 : vector<8x32xf32>
    %74 = vector.broadcast %1 : vector<1x32xf32> to vector<8x32xf32>
    %75 = arith.addf %73, %74 : vector<8x32xf32>
    %76 = arith.addf %19, %75 : vector<8x32xf32>
    %cst_38 = arith.constant dense<0.000000e+00> : vector<8xf32>
    %77 = vector.multi_reduction <add>, %76, %cst_38 [1] : vector<8x32xf32> to vector<8xf32>
    %78 = vector.shape_cast %77 : vector<8xf32> to vector<8x1xf32>
    %cst_39 = arith.constant 3.200000e+01 : f32
    %79 = vector.broadcast %cst_39 : f32 to vector<8x1xf32>
    %80 = arith.divf %78, %79 : vector<8x1xf32>
    %81 = arith.mulf %76, %76 : vector<8x32xf32>
    %cst_40 = arith.constant dense<0.000000e+00> : vector<8xf32>
    %82 = vector.multi_reduction <add>, %81, %cst_40 [1] : vector<8x32xf32> to vector<8xf32>
    %83 = vector.shape_cast %82 : vector<8xf32> to vector<8x1xf32>
    %cst_41 = arith.constant 3.200000e+01 : f32
    %84 = vector.broadcast %cst_41 : f32 to vector<8x1xf32>
    %85 = arith.divf %83, %84 : vector<8x1xf32>
    %86 = arith.mulf %80, %80 : vector<8x1xf32>
    %87 = arith.subf %85, %86 : vector<8x1xf32>
    %88 = vector.broadcast %80 : vector<8x1xf32> to vector<8x32xf32>
    %89 = arith.subf %76, %88 : vector<8x32xf32>
    %cst_42 = arith.constant 9.99999974E-6 : f32
    %90 = vector.broadcast %cst_42 : f32 to vector<8x1xf32>
    %91 = arith.addf %87, %90 : vector<8x1xf32>
    %92 = math.rsqrt %91 : vector<8x1xf32>
    %93 = vector.broadcast %92 : vector<8x1xf32> to vector<8x32xf32>
    %94 = arith.mulf %89, %93 : vector<8x32xf32>
    %95 = vector.broadcast %2 : vector<1x32xf32> to vector<8x32xf32>
    %96 = arith.mulf %94, %95 : vector<8x32xf32>
    %97 = vector.broadcast %3 : vector<1x32xf32> to vector<8x32xf32>
    %98 = arith.addf %96, %97 : vector<8x32xf32>
    %c0_43 = arith.constant 0 : index
    %c0_44 = arith.constant 0 : index
    %99 = vector.load %arg6[%c0_43, %c0_44] : memref<32x2xf32, #tpu.memory_space<vmem>>, vector<32x2xf32>
    %cst_45 = arith.constant dense<0.000000e+00> : vector<8x2xf32>
    %100 = tpu.matmul %98, %99, %cst_45 {dimension_numbers = #tpu.dot_dimension_numbers<[1], [0], [0], [1], [0, 0, 1, 1], [], []>} : vector<8x32xf32>, vector<32x2xf32>, vector<8x2xf32> -> vector<8x2xf32>
    %101 = vector.broadcast %4 : vector<1x2xf32> to vector<8x2xf32>
    %102 = arith.addf %100, %101 : vector<8x2xf32>
    %cst_46 = arith.constant 0.000000e+00 : f32
    %103 = vector.broadcast %cst_46 : f32 to vector<8x2xf32>
    %104 = arith.maximumf %102, %103 : vector<8x2xf32>
    %105 = vector.extract_strided_slice %104 {offsets = [0, 0], sizes = [8, 1], strides = [1, 1]} : vector<8x2xf32> to vector<8x1xf32>
    %106 = vector.broadcast %105 : vector<8x1xf32> to vector<8x32xf32>
    %107 = vector.broadcast %5 : vector<1x32xf32> to vector<8x32xf32>
    %108 = arith.mulf %106, %107 : vector<8x32xf32>
    %109 = vector.extract_strided_slice %104 {offsets = [0, 1], sizes = [8, 1], strides = [1, 1]} : vector<8x2xf32> to vector<8x1xf32>
    %110 = vector.broadcast %109 : vector<8x1xf32> to vector<8x32xf32>
    %111 = vector.broadcast %6 : vector<1x32xf32> to vector<8x32xf32>
    %112 = arith.mulf %110, %111 : vector<8x32xf32>
    %113 = arith.addf %108, %112 : vector<8x32xf32>
    %114 = vector.broadcast %7 : vector<1x32xf32> to vector<8x32xf32>
    %115 = arith.addf %113, %114 : vector<8x32xf32>
    %116 = arith.addf %98, %115 : vector<8x32xf32>
    %cst_47 = arith.constant dense<0.000000e+00> : vector<8xf32>
    %117 = vector.multi_reduction <add>, %116, %cst_47 [1] : vector<8x32xf32> to vector<8xf32>
    %118 = vector.shape_cast %117 : vector<8xf32> to vector<8x1xf32>
    %cst_48 = arith.constant 3.200000e+01 : f32
    %119 = vector.broadcast %cst_48 : f32 to vector<8x1xf32>
    %120 = arith.divf %118, %119 : vector<8x1xf32>
    %121 = arith.mulf %116, %116 : vector<8x32xf32>
    %cst_49 = arith.constant dense<0.000000e+00> : vector<8xf32>
    %122 = vector.multi_reduction <add>, %121, %cst_49 [1] : vector<8x32xf32> to vector<8xf32>
    %123 = vector.shape_cast %122 : vector<8xf32> to vector<8x1xf32>
    %cst_50 = arith.constant 3.200000e+01 : f32
    %124 = vector.broadcast %cst_50 : f32 to vector<8x1xf32>
    %125 = arith.divf %123, %124 : vector<8x1xf32>
    %126 = arith.mulf %120, %120 : vector<8x1xf32>
    %127 = arith.subf %125, %126 : vector<8x1xf32>
    %128 = vector.broadcast %120 : vector<8x1xf32> to vector<8x32xf32>
    %129 = arith.subf %116, %128 : vector<8x32xf32>
    %cst_51 = arith.constant 9.99999974E-6 : f32
    %130 = vector.broadcast %cst_51 : f32 to vector<8x1xf32>
    %131 = arith.addf %127, %130 : vector<8x1xf32>
    %132 = math.rsqrt %131 : vector<8x1xf32>
    %133 = vector.broadcast %132 : vector<8x1xf32> to vector<8x32xf32>
    %134 = arith.mulf %129, %133 : vector<8x32xf32>
    %135 = vector.broadcast %8 : vector<1x32xf32> to vector<8x32xf32>
    %136 = arith.mulf %134, %135 : vector<8x32xf32>
    %137 = vector.broadcast %9 : vector<1x32xf32> to vector<8x32xf32>
    %138 = arith.addf %136, %137 : vector<8x32xf32>
    %139 = vector.shape_cast %138 : vector<8x32xf32> to vector<1x8x32xf32>
    %cst_52 = arith.constant dense<0.000000e+00> : vector<1x32xf32>
    %140 = vector.multi_reduction <add>, %139, %cst_52 [1] : vector<1x8x32xf32> to vector<1x32xf32>
    %cst_53 = arith.constant 8.000000e+00 : f32
    %141 = vector.broadcast %cst_53 : f32 to vector<1x32xf32>
    %142 = arith.divf %140, %141 : vector<1x32xf32>
    %cst_54 = arith.constant 0.000000e+00 : f32
    %143 = vector.broadcast %cst_54 : f32 to vector<1x32xf32>
    %144 = arith.maximumf %142, %143 : vector<1x32xf32>
    %cst_55 = arith.constant dense<0xFF800000> : vector<1x32xf32>
    %145 = vector.multi_reduction <maximumf>, %139, %cst_55 [1] : vector<1x8x32xf32> to vector<1x32xf32>
    %cst_56 = arith.constant 0.000000e+00 : f32
    %146 = vector.broadcast %cst_56 : f32 to vector<1x32xf32>
    %147 = arith.maximumf %145, %146 : vector<1x32xf32>
    %148 = tpu.concatenate %147, %144 in 1 : vector<1x32xf32>, vector<1x32xf32> -> vector<1x64xf32>
    %c0_57 = arith.constant 0 : index
    %c0_58 = arith.constant 0 : index
    %149 = vector.load %arg7[%c0_57, %c0_58] : memref<64x128xf32, #tpu.memory_space<vmem>>, vector<64x128xf32>
    %cst_59 = arith.constant dense<0.000000e+00> : vector<1x128xf32>
    %150 = tpu.matmul %148, %149, %cst_59 {dimension_numbers = #tpu.dot_dimension_numbers<[1], [0], [0], [1], [0, 0, 1, 1], [], []>} : vector<1x64xf32>, vector<64x128xf32>, vector<1x128xf32> -> vector<1x128xf32>
    %151 = arith.addf %150, %10 : vector<1x128xf32>
    %152 = vector.shape_cast %151 : vector<1x128xf32> to vector<1x1x128xf32>
    %c0_60 = arith.constant 0 : index
    %c0_61 = arith.constant 0 : index
    %c0_62 = arith.constant 0 : index
    %153 = vector.load %arg9[%c0_60, %c0_61, %c0_62] : memref<1x1x128xf32, #tpu.memory_space<vmem>>, vector<1x1x128xf32>
    tpu.vector_store %arg9[%c0_60, %c0_61, %c0_62], %152 {strides = array<i32>} : memref<1x1x128xf32, #tpu.memory_space<vmem>>, vector<1x1x128xf32>,
    return
  }
  func.func @transform_0(%arg0: i32) -> (i32, i32, i32) {
    %c0_i32 = arith.constant 0 : i32
    %c0_i32_0 = arith.constant 0 : i32
    %c0_i32_1 = arith.constant 0 : i32
    return %arg0, %c0_i32, %c0_i32_0 : i32, i32, i32
  }
  func.func @transform_1(%arg0: i32) -> (i32, i32, i32) {
    %c0_i32 = arith.constant 0 : i32
    %c0_i32_0 = arith.constant 0 : i32
    %c0_i32_1 = arith.constant 0 : i32
    return %arg0, %c0_i32, %c0_i32_0 : i32, i32, i32
  }
  func.func @transform_2(%arg0: i32) -> (i32, i32) {
    %c0_i32 = arith.constant 0 : i32
    %c0_i32_0 = arith.constant 0 : i32
    %c0_i32_1 = arith.constant 0 : i32
    return %c0_i32, %c0_i32_0 : i32, i32
  }
  func.func @transform_3(%arg0: i32) -> (i32, i32) {
    %c0_i32 = arith.constant 0 : i32
    %c0_i32_0 = arith.constant 0 : i32
    %c0_i32_1 = arith.constant 0 : i32
    return %c0_i32, %c0_i32_0 : i32, i32
  }
  func.func @transform_4(%arg0: i32) -> (i32, i32) {
    %c0_i32 = arith.constant 0 : i32
    %c0_i32_0 = arith.constant 0 : i32
    %c0_i32_1 = arith.constant 0 : i32
    return %c0_i32, %c0_i32_0 : i32, i32
  }
  func.func @transform_5(%arg0: i32) -> (i32, i32) {
    %c0_i32 = arith.constant 0 : i32
    %c0_i32_0 = arith.constant 0 : i32
    %c0_i32_1 = arith.constant 0 : i32
    return %c0_i32, %c0_i32_0 : i32, i32
  }
  func.func @transform_6(%arg0: i32) -> (i32, i32) {
    %c0_i32 = arith.constant 0 : i32
    %c0_i32_0 = arith.constant 0 : i32
    %c0_i32_1 = arith.constant 0 : i32
    return %c0_i32, %c0_i32_0 : i32, i32
  }
  func.func @transform_7(%arg0: i32) -> (i32, i32) {
    %c0_i32 = arith.constant 0 : i32
    %c0_i32_0 = arith.constant 0 : i32
    %c0_i32_1 = arith.constant 0 : i32
    return %c0_i32, %c0_i32_0 : i32, i32
  }
  func.func @transform_8(%arg0: i32) -> (i32, i32, i32) {
    %c0_i32 = arith.constant 0 : i32
    %c0_i32_0 = arith.constant 0 : i32
    %c0_i32_1 = arith.constant 0 : i32
    return %arg0, %c0_i32, %c0_i32_0 : i32, i32, i32
  }
}

</mosaic_0001>

<bundles_post_ra>
// kernel: tpu_custom_call.1
= control target key start
LH: loop header
LB: loop body
LE: loop exit
PB: predicated region body
PF: predicated region fallthrough
CT: control target
= control target key end

     0   :  { %13 = vsyncpa [#allocation3], 0  ;;  %s2089_s0 = inlined_call_operand.vmem [shape: s32[2,8,1], index: 0, kind: input, shape index: {}]   ;;  %s2090_s1 = inlined_call_operand.vmem [shape: s32[2,1,8], index: 1, kind: input, shape index: {}]   ;;  %s2091_s2 = inlined_call_operand.vmem [shape: f32[128,32], index: 2, kind: input, shape index: {}]   ;;  %s2092_s3 = inlined_call_operand.vmem [shape: f32[32,96], index: 3, kind: input, shape index: {}]   ;;  %s2093_s4 = inlined_call_operand.vmem [shape: f32[32,32], index: 4, kind: input, shape index: {}]   ;;  %s2094_s5 = inlined_call_operand.vmem [shape: f32[32,2], index: 5, kind: input, shape index: {}]   ;;  %s2095_s6 = inlined_call_operand.vmem [shape: f32[64,128], index: 6, kind: input, shape index: {}]   ;;  %s2096_s7 = inlined_call_operand.vmem [shape: f32[16,128], index: 7, kind: input, shape index: {}]   ;;  %s2097_s8 = inlined_call_operand.hbm [shape: f32[2,1,128], index: 8, kind: output, shape index: {}]  }
   0x1   :  { %15 = vsyncpa [#allocation3 + $0x1], 0  ;;  %s1773_s27 = smov 0   ;;  %s1775_s28 = smov 0  }
   0x2   :  { %s1777_s29 = smov 0   ;;  %s1779_s30 = smov 0  }
   0x3 LB: > { %s1794_s9 = sadd.s32 4294967295, %s1713_s30   ;;  %s1340_s10 = sadd.s32 4294967294, %s1713_s30   ;;  %s1713_s30 = sphi %s1779_s30, %s2103_s30   ;;  %s1709_s29 = sphi %s1777_s29, %s2102_s29   ;;  %s1705_s28 = sphi %s1775_s28, %s2101_s28   ;;  %s1701_s27 = sphi %s1773_s27, %s2100_s27  }
   0x4   : > { %s1798_s11 = sadd.s32 1, %s1713_s30   ;;  %s206_s12 = sadd.s32 1, %s1709_s29 }
   0x5   : > { %s203_s13 = ssub.s32 %s1713_s30, %s1798_s11  ;;  %p216_p0 = scmp.ne.s32.totalorder %s1709_s29, %s1705_s28 }
   0x6   : > { %p204_p1 = scmp.eq.s32.totalorder %s203_s13, 0  ;;  %p217_p2 = scmp.eq.s32.totalorder %s1794_s9, 1 }
   0x7   : > { %p222_p3 = scmp.ne.s32.totalorder %s1705_s28, %s1701_s27  ;;  %p223_p4 = scmp.eq.s32.totalorder %s1340_s10, 1 }
   0x8   : > { %s1809_s14 = scalar_select %p204_p1, %s1709_s29, %s206_s12  }
   0x9   : > { %p1811_p5 = por %p217_p2, %p216_p0  ;;  %p1815_p6 = por %p223_p4, %p222_p3 }
   0xa   : > { %p1343_p7 = scmp.ge.s32.totalorder %s1713_s30, 1  ;;  %p272_p8 = scmp.lt.s32.totalorder %s1713_s30, 3 }
   0xc   : > { %p273_p9 = pnand %p1343_p7, %p272_p8 }
   0xd   : > { %p307_p10 = scmp.lt.s32.totalorder (!%p273_p9), %s1794_s9, 1  ;;  %v334_v0 = vld [vmem:[%s2091_s2] sm:$0xff] (!%p273_p9)  ;;  %v335_v1 = vld [vmem:[%s2091_s2 + $0x8] sm:$0xff] (!%p273_p9)  ;;  %v336_v2 = vld [vmem:[%s2091_s2 + $0x10] sm:$0xff] (!%p273_p9)  ;;  %v1715_v3 = vmov (!%p273_p9), 0   ;;  %v1716_v4 = vmov (!%p273_p9), 0.0|0.0   ;;  %v326_v34 = vlaneseq (!%p273_p9) }
   0xe   : > { %276 = sbr.rel (%p273_p9) target bundleno = 3244 (0xcac), region = 52  ;;  %1636 = vset.pattern.permute.xlu0 (!%p273_p9), %v1715_v3  ;;  %1531 = vmatprep.subr.bf16.mxu0 (!%p273_p9), %v1716_v4  ;;  %v1532_v5 = vpack.c.bf16 (!%p273_p9), %v335_v1, %v334_v0  ;;  %v337_v6 = vld [vmem:[%s2091_s2 + $0x18] sm:$0xff] (!%p273_p9)  ;;  %v338_v8 = vld [vmem:[%s2091_s2 + $0x20] sm:$0xff] (!%p273_p9)  ;;  %v339_v9 = vld [vmem:[%s2091_s2 + $0x28] sm:$0xff] (!%p273_p9)  ;;  %vm1717_vm0 = vmmov (!%p273_p9), 0   ;;  %v1718_v14 = vmov (!%p273_p9), 0.0  }
   0xf   : > { %1555 = vmatprep.subr.bf16.mxu1 (!%p273_p9), %v1716_v4  ;;  %v1535_v7 = vpack.c.bf16 (!%p273_p9), %v337_v6, %v336_v2  ;;  %v1538_v11 = vpack.c.bf16 (!%p273_p9), %v339_v9, %v338_v8  ;;  %v340_v12 = vld [vmem:[%s2091_s2 + $0x30] sm:$0xff] (!%p273_p9)  ;;  %v341_v13 = vld [vmem:[%s2091_s2 + $0x38] sm:$0xff] (!%p273_p9)  ;;  %1453 = vmatprep.mubr.msk.f32.mxu0 (!%p273_p9), %vm1717_vm0, %v1718_v14  ;;  %v423_v15 = vld [vmem:[%s2092_s3] sm:$0xff] (!%p273_p9)  ;;  %v327_v35 = vand.u32 (!%p273_p9), 127, %v326_v34  ;;  %v1719_v37 = vmov (!%p273_p9), 1.0   ;;  %s1720_s12 = smov (!%p273_p9), 96  }
  0x10   : > { %1533 = vmatpush3.bf16.msra.mxu0 (!%p273_p9), %v1532_v5  ;;  %v424_v16 = vld [vmem:[%s2092_s3 + $0x8] sm:$0xff] (!%p273_p9)  ;;  %v425_v17 = vld [vmem:[%s2092_s3 + $0x10] sm:$0xff] (!%p273_p9)  ;;  %v426_v19 = vld [vmem:[%s2092_s3 + $0x18] sm:$0xff] (!%p273_p9)  ;;  %1464 = vmatprep.mubr.msk.f32.mxu1 (!%p273_p9), %vm1717_vm0, %v1718_v14  ;;  %v1541_v20 = vpack.c.bf16 (!%p273_p9), %v341_v13, %v340_v12  ;;  %vm431_vm2 = vcmask (!%p273_p9), 261120   ;;  %s1721_s13 = smov (!%p273_p9), 64   ;;  %s1722_s17 = smov (!%p273_p9), 112  }
  0x11   : > { %1534 = vmatprep.subr.bf16.mxu0 (!%p273_p9), %v1716_v4  ;;  %v1556_v18 = vpack.c.bf16 (!%p273_p9), %v424_v16, %v423_v15  ;;  %v1559_v21 = vpack.c.bf16 (!%p273_p9), %v426_v19, %v425_v17  ;;  %v342_v22 = vld [vmem:[%s2091_s2 + $0x40] sm:$0xff] (!%p273_p9)  ;;  %v343_v23 = vld [vmem:[%s2091_s2 + $0x48] sm:$0xff] (!%p273_p9)  ;;  %v344_v25 = vld [vmem:[%s2091_s2 + $0x50] sm:$0xff] (!%p273_p9)  ;;  %vm514_vm3 = vcmask (!%p273_p9), 130048   ;;  %v507_v47 = vshrl.u32 (!%p273_p9), %v326_v34, 7  ;;  %s1724_s21 = smov (!%p273_p9), 48  }
  0x12   : > { %v1544_v24 = vpack.c.bf16 (!%p273_p9), %v343_v23, %v342_v22  ;;  %v345_v26 = vld [vmem:[%s2091_s2 + $0x58] sm:$0xff] (!%p273_p9)  ;;  %v346_v28 = vld [vmem:[%s2091_s2 + $0x60] sm:$0xff] (!%p273_p9)  ;;  %v347_v29 = vld [vmem:[%s2091_s2 + $0x68] sm:$0xff] (!%p273_p9)  ;;  %vm589_vm5 = vcmask (!%p273_p9), 64512   ;;  %vm1188_vm6 = vcmask (!%p273_p9), 523264   ;;  %s1368_s24 = sshll.u32 (!%p273_p9), %s1794_s9, 4 }
  0x13   : > { %1557 = vmatpush3.bf16.msra.mxu1 (!%p273_p9), %v1556_v18  ;;  %v1547_v27 = vpack.c.bf16 (!%p273_p9), %v345_v26, %v344_v25  ;;  %v1550_v30 = vpack.c.bf16 (!%p273_p9), %v347_v29, %v346_v28  ;;  %v348_v31 = vld [vmem:[%s2091_s2 + $0x70] sm:$0xff] (!%p273_p9)  ;;  %v349_v32 = vld [vmem:[%s2091_s2 + $0x78] sm:$0xff] (!%p273_p9)  ;;  %v1347_v40 = vld [vmem:[%s2096_s7] ss:$0 sm:$0xff] (!%p273_p9)  ;;  %v508_v48 = vsub.s32 (!%p273_p9), 0, %v507_v47 }
  0x14   : > { %1536 = vmatpush3.bf16.msra.mxu0 (!%p273_p9), %v1535_v7  ;;  %1558 = vmatprep.subr.bf16.mxu1 (!%p273_p9), %v1716_v4  ;;  %v1553_v33 = vpack.c.bf16 (!%p273_p9), %v349_v32, %v348_v31  ;;  %v844_v16 = vld [vmem:[%s2093_s4 + $0x10] sm:$0xff] (!%p273_p9)  ;;  %v845_v17 = vld [vmem:[%s2093_s4 + $0x18] sm:$0xff] (!%p273_p9)  ;;  %v678_v22 = vld [vmem:[%s2093_s4 + $0x8] sm:$0xff] (!%p273_p9) }
  0x15   : > { %s1836_s25 = scalar_select %p307_p10, %s1794_s9, 1  ;;  %1537 = vmatprep.subr.bf16.mxu0 %v1716_v4  ;;  %v1562_v19 = vpack.c.bf16 %v845_v17, %v844_v16  ;;  %v1357_v28 = vld [vmem:[%s2096_s7 + $0x1] ss:$0 sm:$0xff]  ;;  %v1183_v17 = vld [vmem:[%s2095_s6 + $0x18] sm:$0xff] }
  0x16   : > { %s1727_s9 = smov [#allocation2]  }
  0x17   : > { %s1344_s26 = sshll.u32 %s1836_s25, 3  ;;  %1560 = vmatpush3.bf16.msra.mxu1 %v1559_v21  ;;  %v677_v21 = vld [vmem:[%s2093_s4] sm:$0xff] }
  0x18   : > { %s310_s20 = scalar_lea.vmem %s2089_s0, %s1344_s26  ;;  %1539 = vmatpush3.bf16.msra.mxu0 %v1538_v11  ;;  %1472 = vmatprep.subr.mxu1 %v1718_v14  ;;  %v1565_v23 = vpack.c.bf16 %v678_v22, %v677_v21  ;;  %v1186_v22 = vld [vmem:[%s2095_s6 + $0x30] sm:$0xff] }
  0x19   : > { %v325_v10 = vld [vmem:[%s310_s20] sm:$0xff]  ;;  %1540 = vmatprep.subr.bf16.mxu0 %v1716_v4  ;;  %s313_s20 = scalar_lea.vmem %s2090_s1, %s1836_s25  ;;  %s1723_s25 = smov 80  }
  0x1a   : > { %329 = vperm.xlu0 %1636, %v325_v10   ;;  %v420_v46 = vld [vmem:[%s313_s20] sm:$0x1]  ;;  %s1655_s20 = sshll.u32 %s1727_s9, 4  ;;  %s1656_s20 = int_to_ptr.vmem [resolvable:$false] %s1655_s20 }
  0x1b   : > { %vm421_vm4 = vcmp.ne.s32.totalorder %v420_v46, 0 }
  0x1c   : > { %1542 = vmatpush3.bf16.msra.mxu0 %v1541_v20  ;;  %v422_v49 = vsel %vm421_vm4, -1e+09, %v1718_v14 }
  0x1d   : > { %1543 = vmatprep.subr.bf16.mxu0 %v1716_v4  ;;  %v509_v50 = vrot.slane %v422_v49, %v508_v48 }
  0x20   : > { %1545 = vmatpush3.bf16.msra.mxu0 %v1544_v24 }
  0x21   : > { %1546 = vmatprep.subr.bf16.mxu0 %v1716_v4 }
  0x24   : > { %1548 = vmatpush3.bf16.msra.mxu0 %v1547_v27 }
  0x25   : > { %1549 = vmatprep.subr.bf16.mxu0 %v1716_v4 }
  0x28   : > { %1551 = vmatpush3.bf16.msra.mxu0 %v1550_v30 }
  0x29   : > { %1552 = vmatprep.subr.bf16.mxu0 %v1716_v4 }
  0x2c   : > { %1554 = vmatpush3.bf16.msra.mxu0 %v1553_v33 }
  0x2d   : > { %1467 = vmatprep.subr.mxu0 %v1718_v14 }
  0x99   : > { %v330_v36 = vpop.permute.xlu0 %329 }
  0x9a   : > { %vm331_vm1 = vcmp.eq.s32.totalorder %v330_v36, %v327_v35 }
  0x9b   : > { %1454 = vmatmul.mubr.msk.f32.vlgmr.msra.gmra.mrb[0].mxu0 %vm331_vm1, %v1719_v37  ;;  %v1025_v37 = vld [vmem:[%s2094_s5 + $0x8] sm:$0xff] }
  0x9c   : > { %1469 = vmatprep.mubr.msk.f32.mxu0 %vm1717_vm0, %v1718_v14 }
 0x16e   : > { %v1907_v38 = vpop.f32.mrb[0].mxu0 }
 0x16f   : > { %v1455_v39 = vpop.f32.mrb[1].mxu0  ;;  %1465 = vmatmul.mubr.msk.f32.vlgmr.msra.gmra.mrb[0].mxu1 %vm431_vm2, %v1907_v38 }
 0x170   : > { %1474 = vmatprep.mubr.msk.f32.mxu1 %vm1717_vm0, %v1718_v14 }
 0x242   : > { %v501_v41 = vpop.f32.mrb[0].mxu1 }
 0x243   : > { %v502_v42 = vadd.f32 %v1347_v40, %v501_v41  ;;  %v1466_v43 = vpop.f32.mrb[1].mxu1  ;;  %v1027_v40 = vld [vmem:[%s2094_s5 + $0x18] sm:$0xff] }
 0x245   : > { %512 = vrot.lane.b32.xlu0 %v502_v42, %s1720_s12 }
 0x249   : > { %601 = vrot.lane.b32.xlu0 %v502_v42, %s1721_s13 }
 0x24d   : > { %679 = vrot.lane.b32.xlu0 %v502_v42, %s1722_s17  ;;  %s2047_s17 = scalar_lea.hbm %s2097_s8, %s1368_s24 }
 0x2b7   : > { %v513_v44 = vpop.permute.xlu0 %512 }
 0x2b8   : > { %1468 = vmatpush3.xpose.msk.msra.mxu0 %vm514_vm3, %v513_v44 }
 0x2b9   : > { %1567 = vmatprep.subr.bf16.mxu0 %v1716_v4 }
 0x2bb   : > { %1470 = vmatmul.mubr.msk.f32.vlgmr.msra.gmra.mrb[2].mxu0 %vm514_vm3, %v502_v42  ;;  %v602_v45 = vpop.permute.xlu0 %601 }
 0x2bc   : > { %1473 = vmatpush3.msra.mxu1 %v602_v45  ;;  %1509 = vmatprep.mubr.msk.f32.mxu0 %vm1717_vm0, %v1718_v14 }
 0x2bd   : > { %1477 = vmatprep.subr.mxu1 %v1718_v14 }
 0x2bf   : > { %v680_v0 = vpop.permute.xlu0 %679 }
 0x38e   : > { %v585_v51 = vpop.f32.mrb[2].mxu0 }
 0x38f   : > { %v586_v52 = vadd.f32 %v585_v51, %v509_v50  ;;  %v1471_v53 = vpop.f32.mrb[3].mxu0  ;;  %v1358_v51 = vld [vmem:[%s2096_s7 + $0x2] ss:$0 sm:$0xff] }
 0x390   : > { %v1359_v53 = vld [vmem:[%s2096_s7 + $0x3] ss:$0 sm:$0xff] }
 0x391   : > { %v590_v54 = vsel %vm589_vm5, %v586_v52, -inf }
 0x392   : > { %591 = vmax.xlane.f32.xlu1 %v590_v54 }
 0x41f   : > { %v592_v55 = vpop.xlane.xlu1 %591 }
 0x420   : > { %v593_v56 = vsub.f32 %v586_v52, %v592_v55 }
 0x422   : > { %v594_v57 = vmul.f32 1.442695, %v593_v56  ;;  %v1725_v56 = vmov 1  }
 0x423   : > { %1637 = vset.pattern.permute.xlu1 %v1725_v56 }
 0x424   : > { %1639 = vpow2.f32 %v594_v57  ;;  %v1360_v57 = vld [vmem:[%s2096_s7 + $0x4] ss:$0 sm:$0xff] }
 0x42e   : > { %v1640_v58 = vpop.eup %1639 }
 0x42f   : > { %v596_v59 = vsel %vm589_vm5, %v1640_v58, 0.0 }
 0x430   : > { %597 = vadd.xlane.f32.xlu1 %v596_v59 }
 0x441   : > { %681 = vrot.lane.b32.xlu1 %v502_v42, %s1723_s25  ;;  %s1726_s25 = smov 32  }
 0x4bd   : > { %v598_v60 = vpop.xlane.xlu1 %597 }
 0x4be   : > { %1641 = vrcp.f32 %v598_v60 }
 0x4c1   : > { %v682_v63 = vpop.permute.xlu1 %681 }
 0x4c8   : > { %v1642_v61 = vpop.eup %1641 }
 0x4c9   : > { %v600_v62 = vmul.f32 %v1642_v61, %v1640_v58 }
 0x4cb   : > { %1475 = vmatmul.mubr.msk.f32.vlgmr.msra.gmra.mrb[2].mxu1 %vm589_vm5, %v600_v62  ;;  %v1363_v62 = vld [vmem:[%s2096_s7 + $0x6] ss:$0 sm:$0xff] }
 0x4cc   : > { %1478 = vmatpush3.xpose.msk.msra.mxu1 %vm514_vm3, %v682_v63  ;;  %1479 = vmatprep.mubr.msk.f32.mxu1 %vm1717_vm0, %v1718_v14  ;;  %v1362_v63 = vld [vmem:[%s2096_s7 + $0x5] ss:$0 sm:$0xff] }
 0x4cd   : > { %1482 = vmatprep.subr.mxu1 %v1718_v14 }
 0x4cf   : > { %1480 = vmatmul.mubr.msk.f32.vlgmr.msra.gmra.mrb[4].mxu1 %vm514_vm3, %v680_v0 }
 0x4d0   : > { %1484 = vmatprep.mubr.msk.f32.mxu1 %vm1717_vm0, %v1718_v14 }
 0x59e   : > { %v673_v1 = vpop.f32.mrb[2].mxu1 }
 0x59f   : > { %v1476_v2 = vpop.f32.mrb[3].mxu1 }
 0x5a2   : > { %v753_v3 = vpop.f32.mrb[4].mxu1 }
 0x5a3   : > { %v754_v5 = vadd.f32 %v753_v3, %v509_v50  ;;  %v1481_v6 = vpop.f32.mrb[5].mxu1 }
 0x5a5   : > { %v757_v7 = vsel %vm589_vm5, %v754_v5, -inf }
 0x5a6   : > { %758 = vmax.xlane.f32.xlu0 %v757_v7 }
 0x5bc   : > { %768 = vrot.lane.b32.xlu0 %v502_v42, %s1724_s21  ;;  %s305_s21 = sand.u32 1, %s1705_s28  }
 0x5bd   : > { %s306_s26 = scalar_lea.vmem [#allocation2], %s305_s21  ;;  %s1264_s18 = scalar_lea.sflag [#allocation3], %s305_s21 }
 0x5be   : > { %s1276_s10 = sshll.u32 %s306_s26, 4  ;;  %s2049_s10 = int_to_ptr.vmem [resolvable:$true] %s1276_s10 }
 0x5bf   : > { %s1651_s19 = scalar_lea.vmem %s2049_s10, 16  ;;  %p1658_p0 = scmp.lt.s32.totalorder %s2049_s10, %s1656_s20 }
 0x5c0   : > { %p1652_p11 = scmp.ne.s32.totalorder %s2049_s10, %s1651_s19 }
 0x5c2   : > { %p1653_p12 = pnand %p1652_p11, %p1811_p5 }
 0x5c4   : > { %p1654_p13 = pneg %p1653_p12 }
 0x633   : > { %v759_v8 = vpop.xlane.xlu0 %758 }
 0x634   : > { %v760_v9 = vsub.f32 %v754_v5, %v759_v8  ;;  %v1364_v5 = vld [vmem:[%s2096_s7 + $0x7] ss:$0 sm:$0xff] }
 0x636   : > { %v761_v10 = vmul.f32 1.442695, %v760_v9 }
 0x637   : > { %v769_v11 = vpop.permute.xlu0 %768 }
 0x638   : > { %1643 = vpow2.f32 %v761_v10  ;;  %1483 = vmatpush3.msra.mxu1 %v769_v11 }
 0x639   : > { %1561 = vmatprep.subr.bf16.mxu1 %v1716_v4 }
 0x642   : > { %v1644_v12 = vpop.eup %1643 }
 0x643   : > { %v763_v13 = vsel %vm589_vm5, %v1644_v12, 0.0 }
 0x644   : > { %764 = vadd.xlane.f32.xlu1 %v763_v13  ;;  %v1181_v13 = vld [vmem:[%s2095_s6 + $0x8] sm:$0xff] }
 0x6d1   : > { %v765_v15 = vpop.xlane.xlu1 %764 }
 0x6d2   : > { %1645 = vrcp.f32 %v765_v15  ;;  %v1182_v15 = vld [vmem:[%s2095_s6 + $0x10] sm:$0xff] }
 0x6dc   : > { %v1646_v18 = vpop.eup %1645 }
 0x6dd   : > { %v767_v20 = vmul.f32 %v1646_v18, %v1644_v12  ;;  %v1180_v12 = vld [vmem:[%s2095_s6] sm:$0xff]  ;;  %v1577_v18 = vpack.c.bf16 %v1183_v17, %v1182_v15 }
 0x6de   : > { %v1574_v16 = vpack.c.bf16 %v1181_v13, %v1180_v12 }
 0x6df   : > { %1485 = vmatmul.mubr.msk.f32.vlgmr.msra.gmra.mrb[6].mxu1 %vm589_vm5, %v767_v20  ;;  %v1185_v20 = vld [vmem:[%s2095_s6 + $0x28] sm:$0xff] }
 0x6e0   : > { %1563 = vmatpush3.bf16.msra.mxu1 %v1562_v19  ;;  %1491 = vmatprep.mubr.msk.f32.mxu1 %vm1717_vm0, %v1718_v14  ;;  %v1184_v19 = vld [vmem:[%s2095_s6 + $0x20] sm:$0xff] }
 0x6e1   : > { %1564 = vmatprep.subr.bf16.mxu1 %v1716_v4  ;;  %v1580_v21 = vpack.c.bf16 %v1185_v20, %v1184_v19 }
 0x7b2   : > { %v840_v24 = vpop.f32.mrb[6].mxu1 }
 0x7b3   : > { %v1486_v25 = vpop.f32.mrb[7].mxu1  ;;  %1492 = vmatmul.mubr.msk.f32.vlgmr.msra.gmra.mrb[8].mxu1 %vm514_vm3, %v840_v24 }
 0x7b4   : > { %1566 = vmatpush3.bf16.msra.mxu1 %v1565_v23  ;;  %1498 = vmatprep.mubr.msk.f32.mxu1 %vm1717_vm0, %v1718_v14  ;;  %v1187_v23 = vld [vmem:[%s2095_s6 + $0x38] sm:$0xff] }
 0x7b5   : > { %1573 = vmatprep.subr.bf16.mxu1 %v1716_v4  ;;  %v1583_v24 = vpack.c.bf16 %v1187_v23, %v1186_v22 }
 0x7b7   : > { %1499 = vmatmul.mubr.msk.f32.vlgmr.msra.gmra.mrb[10].mxu1 %vm514_vm3, %v673_v1 }
 0x7b8   : > { %1528 = vmatprep.mubr.msk.f32.mxu1 %vm1717_vm0, %v1718_v14  ;;  %v1024_v14 = vld [vmem:[%s2094_s5] sm:$0xff]  ;;  %1575 = vmatpush3.bf16.msra.mxu1 %v1574_v16 }
 0x7b9   : > { %v1568_v39 = vpack.c.bf16 %v1025_v37, %v1024_v14  ;;  %1576 = vmatprep.subr.bf16.mxu1 %v1716_v4 }
 0x7bb   : > { %1569 = vmatpush3.bf16.msra.mxu0 %v1568_v39 }
 0x7bc   : > { %1570 = vmatprep.subr.bf16.mxu0 %v1716_v4  ;;  %1578 = vmatpush3.bf16.msra.mxu1 %v1577_v18 }
 0x7bd   : > { %1579 = vmatprep.subr.bf16.mxu1 %v1716_v4 }
 0x7c0   : > { %1581 = vmatpush3.bf16.msra.mxu1 %v1580_v21 }
 0x7c1   : > { %1582 = vmatprep.subr.bf16.mxu1 %v1716_v4  ;;  %v1366_v4 = vld [vmem:[%s2096_s7 + $0x9] ss:$0 sm:$0xff] }
 0x7c4   : > { %1584 = vmatpush3.bf16.msra.mxu1 %v1583_v24 }
 0x886   : > { %v915_v26 = vpop.f32.mrb[8].mxu1 }
 0x887   : > { %v1493_v27 = vpop.f32.mrb[9].mxu1 }
 0x88a   : > { %v988_v29 = vpop.f32.mrb[10].mxu1 }
 0x88b   : > { %v989_v30 = vadd.f32 %v988_v29, %v915_v26  ;;  %v1500_v31 = vpop.f32.mrb[11].mxu1 }
 0x88d   : > { %v996_v32 = vadd.f32 %v1357_v28, %v989_v30 }
 0x88f   : > { %v997_v33 = vadd.f32 %v996_v32, %v1907_v38  ;;  %v1026_v38 = vld [vmem:[%s2094_s5 + $0x10] sm:$0xff] }
 0x890   : > { %v1571_v41 = vpack.c.bf16 %v1027_v40, %v1026_v38 }
 0x891   : > { %v998_v34 = vsel %vm431_vm2, %v997_v33, 0.0  ;;  %v1003_v35 = vmul.f32 %v997_v33, %v997_v33 }
 0x892   : > { %999 = vadd.xlane.f32.xlu1 %v998_v34  ;;  %1572 = vmatpush3.bf16.msra.mxu0 %v1571_v41  ;;  %v1365_v34 = vld [vmem:[%s2096_s7 + $0x8] ss:$0 sm:$0xff] }
 0x893   : > { %v1004_v36 = vsel %vm431_vm2, %v1003_v35, 0.0 }
 0x896   : > { %1005 = vadd.xlane.f32.xlu1 %v1004_v36 }
 0x91f   : > { %v1000_v42 = vpop.xlane.xlu1 %999 }
 0x920   : > { %v1002_v43 = vmul.f32 0.03125, %v1000_v42 }
 0x922   : > { %v1008_v45 = vmul.f32 %v1002_v43, %v1002_v43  ;;  %v1010_v49 = vsub.f32 %v997_v33, %v1002_v43 }
 0x923   : > { %v1006_v44 = vpop.xlane.xlu1 %1005 }
 0x924   : > { %v1007_v46 = vmul.f32 0.03125, %v1006_v44 }
 0x926   : > { %v1009_v47 = vsub.f32 %v1007_v46, %v1008_v45 }
 0x928   : > { %v1011_v48 = vadd.f32 1e-05, %v1009_v47 }
 0x92a   : > { %1647 = vrsqrt.f32 %v1011_v48 }
 0x934   : > { %v1648_v50 = vpop.eup %1647 }
 0x935   : > { %v1013_v52 = vmul.f32 %v1648_v50, %v1010_v49 }
 0x937   : > { %v1018_v54 = vmul.f32 %v1358_v51, %v1013_v52 }
 0x939   : > { %v1023_v55 = vadd.f32 %v1359_v53, %v1018_v54 }
 0x93b   : > { %1510 = vmatmul.mubr.msk.f32.vlgmr.msra.gmra.mrb[4].mxu0 %vm431_vm2, %v1023_v55 }
 0xa0e   : > { %v1101_v58 = vpop.f32.mrb[4].mxu0 }
 0xa0f   : > { %v1102_v59 = vadd.f32 %v1360_v57, %v1101_v58  ;;  %v1511_v60 = vpop.f32.mrb[5].mxu0 }
 0xa11   : > { %v1105_v61 = vmax.f32 %v1102_v59, 0.0 }
 0xa13   : > { %1117 = vperm.xlu1 %1637, %v1105_v61   ;;  %1108 = vperm.xlu0 %1636, %v1105_v61  }
 0xa17   : > { %1638 = vset.pattern.permute.xlu0 %v1725_v56  ;;  %v324_v56 = vld [vmem:[%s2096_s7 + $0xa] sm:$0x1] }
 0xa92   : > { %v1118_v0 = vpop.permute.xlu1 %1117  ;;  %v1109_v1 = vpop.permute.xlu0 %1108 }
 0xa93   : > { %v1124_v2 = vmul.f32 %v1363_v62, %v1118_v0  ;;  %v1115_v3 = vmul.f32 %v1362_v63, %v1109_v1 }
 0xa95   : > { %v1125_v6 = vadd.f32 %v1124_v2, %v1115_v3 }
 0xa97   : > { %v1130_v7 = vadd.f32 %v1364_v5, %v1125_v6 }
 0xa99   : > { %v1131_v8 = vadd.f32 %v1130_v7, %v1023_v55 }
 0xa9b   : > { %v1132_v9 = vsel %vm431_vm2, %v1131_v8, 0.0  ;;  %v1136_v10 = vmul.f32 %v1131_v8, %v1131_v8 }
 0xa9c   : > { %1133 = vadd.xlane.f32.xlu0 %v1132_v9 }
 0xa9d   : > { %v1137_v11 = vsel %vm431_vm2, %v1136_v10, 0.0 }
 0xa9e   : > { %1138 = vadd.xlane.f32.xlu1 %v1137_v11 }
 0xb29   : > { %v1134_v25 = vpop.xlane.xlu0 %1133 }
 0xb2a   : > { %v1135_v26 = vmul.f32 0.03125, %v1134_v25 }
 0xb2b   : > { %v1139_v27 = vpop.xlane.xlu1 %1138 }
 0xb2c   : > { %v1141_v28 = vmul.f32 %v1135_v26, %v1135_v26  ;;  %v1140_v29 = vmul.f32 0.03125, %v1139_v27  ;;  %v1143_v32 = vsub.f32 %v1131_v8, %v1135_v26 }
 0xb2e   : > { %v1142_v30 = vsub.f32 %v1140_v29, %v1141_v28 }
 0xb30   : > { %v1144_v31 = vadd.f32 1e-05, %v1142_v30 }
 0xb32   : > { %1649 = vrsqrt.f32 %v1144_v31 }
 0xb3c   : > { %v1650_v33 = vpop.eup %1649 }
 0xb3d   : > { %v1146_v35 = vmul.f32 %v1650_v33, %v1143_v32 }
 0xb3f   : > { %v1151_v36 = vmul.f32 %v1365_v34, %v1146_v35 }
 0xb41   : > { %v1156_v14 = vadd.f32 %v1366_v4, %v1151_v36 }
 0xb43   : > { %v1157_v37 = vsel %vm431_vm2, %v1156_v14, 0.0  ;;  %v1167_v46 = vsel %vm431_vm2, %v1156_v14, -inf }
 0xb44   : > { %v1158_v39 = vrot.slane %v1157_v37, 4  ;;  %v1168_v47 = vrot.slane %v1167_v46, 4 }
 0xb46   : > { %v1159_v38 = vadd.f32 %v1158_v39, %v1157_v37  ;;  %v1169_v48 = vmax.f32 %v1167_v46, %v1168_v47 }
 0xb48   : > { %v1160_v40 = vrot.slane %v1159_v38, 2  ;;  %v1170_v49 = vrot.slane %v1169_v48, 2 }
 0xb4a   : > { %v1161_v41 = vadd.f32 %v1160_v40, %v1159_v38  ;;  %v1171_v50 = vmax.f32 %v1169_v48, %v1170_v49 }
 0xb4c   : > { %v1162_v42 = vrot.slane %v1161_v41, 1  ;;  %v1172_v51 = vrot.slane %v1171_v50, 1 }
 0xb4e   : > { %v1163_v43 = vadd.f32 %v1162_v42, %v1161_v41  ;;  %v1173_v52 = vmax.f32 %v1171_v50, %v1172_v51 }
 0xb50   : > { %v1165_v44 = vmul.f32 0.125, %v1163_v43  ;;  %v1174_v53 = vmax.f32 %v1173_v52, 0.0 }
 0xb52   : > { %v1166_v45 = vmax.f32 %v1165_v44, 0.0 }
 0xb54   : > { %1176 = vrot.lane.b32.xlu0 %v1166_v45, %s1726_s25  ;;  %s1657_s25 = scalar_lea.vmem %s1656_s20, 32 }
 0xb55   : > { %p1659_p1 = scmp.lt.s32.totalorder %s1657_s25, %s1651_s19 }
 0xb57   : > { %p1660_p2 = por %p1659_p1, %p1658_p0 }
 0xb59   : > { %p1661_p3 = pnand %p1660_p2, %p1654_p13 }
 0xbc6   : > { %v1177_v54 = vpop.permute.xlu0 %1176 }
 0xbc7   : > { %v1179_v55 = vsel %vm431_vm2, %v1174_v53, %v1177_v54 }
 0xbc8   : > { %1529 = vmatmul.mubr.msk.f32.vlgmr.msra.gmra.mrb[12].mxu1 %vm1188_vm6, %v1179_v55 }
 0xc9b   : > { %v1258_v57 = vpop.f32.mrb[12].mxu1 }
 0xc9c   : > { %v1259_v58 = vadd.f32 %v1258_v57, %v324_v56  ;;  %v1530_v59 = vpop.f32.mrb[13].mxu1 }
 0xc9e   : > { %1262 = vst [vmem:[%s306_s26] sm:$0x1] %v1259_v58 }
 0xc9f   : > { %1664 = shalt.err (!%p1661_p3)
}
 0xca0   : > { %s1665_s21 = scalar_lea.hbm %s2047_s17, 16  ;;  %s1669_s24 = scalar_lea.hbm %s2097_s8, 32 }
 0xca1   : > { %p1666_p4 = scmp.ne.s32.totalorder %s2047_s17, %s1665_s21  ;;  %p1670_p9 = scmp.lt.u32.totalorder %s2047_s17, %s2097_s8 }
 0xca2   : > { %p1671_p10 = scmp.lt.u32.totalorder %s1669_s24, %s1665_s21  ;;  %p1673_p12 = scmp.lt.u32.totalorder %s1665_s21, %s2047_s17 }
 0xca3   : > { %p1667_p7 = pnand %p1666_p4, %p1811_p5 }
 0xca4   : > { %p1672_p11 = por %p1671_p10, %p1670_p9 }
 0xca5   : > { %p1668_p8 = pneg %p1667_p7 }
 0xca6   : > { %p1674_p13 = por %p1673_p12, %p1672_p11 }
 0xca8   : > { %p1675_p0 = pnand %p1674_p13, %p1668_p8 }
 0xcaa   : > { %1678 = shalt.err (!%p1675_p0)
}
 0xcab   : > { %1585 = dma.vmem_to_hbm [thread:$0]  (%p1811_p5), %s2049_s10, 16, %s2047_s17, %s1264_s18  }
 0xcac PF: > { %p1591_p1 = scmp.ge.s32.totalorder %s1713_s30, 2  ;;  %s1288_s13 = sand.u32 1, %s1701_s27  }
 0xcad   : > { %s1289_s19 = scalar_lea.sflag [#allocation3], %s1288_s13 }
 0xcae   : > { %p1588_p2 = pnand %p1591_p1, %p1815_p6 }
 0xcb0   : > { %1696 = dma.done.wait (!%p1588_p2), %s1289_s19, 16  }
 0xcb1   : > { %1698 = vsyncadd (!%p1588_p2), %s1289_s19, 4294967280  ;;  %p18_p3 = scmp.ge.s32.totalorder %s1798_s11, 4   ;;  %s2100_s27 = smov %s1705_s28 }
 0xcb2   : > { %s2101_s28 = smov %s1709_s29  ;;  %s2102_s29 = smov %s1809_s14 }
 0xcb3   : > { %s2103_s30 = smov %s1798_s11  ;;  %20 = sbr.rel (!%p18_p3) target bundleno = 3 (0x3), region = 90 }
 0xcba   :  { %1293 = vsyncpa [#allocation3], 1 }
 0xcbb   :  { %1295 = vsyncpa [#allocation3 + $0x1], 1 }

</bundles_post_ra>
